<compile_context>
chip_gen: v6e
topology: v6e:2x2x1
jax: 0.10.0
libtpu: 0.0.40
codegen_flags: <defaults>
</compile_context>

<pallas_src>
import functools
import math

import jax
import jax.numpy as jnp
from jax import lax
from jax.experimental import pallas as pl
from jax.experimental.pallas import tpu as pltpu


# --------------------------------------------------------------------------
# Helpers
# --------------------------------------------------------------------------
def _round_up(n, m):
    return ((n + m - 1) // m) * m


def _vmem_cap_bytes():
    """Generation-aware VMEM ceiling (0.75 * capacity), safe fallback 48 MiB."""
    cap = None
    try:
        info = pltpu.get_tpu_info()
        cap = getattr(info, "vmem_capacity_bytes", None)
    except Exception:
        cap = None
    if not cap:
        return 48 << 20        # 0.75 * 64 MiB: safe on v5e / v6e / v7x
    return int(0.75 * int(cap))


def _pick_tile_rows(B, D_pad, cap):
    """Rows per tile: ~4 live f32 copies of a tile within a budget, cap 1024."""
    budget = max(4 << 20, min(24 << 20, cap // 3))
    per_row = 4 * D_pad * 4
    max_rows = max(8, budget // per_row)
    tb = min(1024, max_rows)
    if tb >= B:
        return B                       # whole batch in one block
    return max(8, (tb // 8) * 8)       # sublane rule


def _fold_scale_shift(mean, std, w_se, b_se, w_re, b_re,
                      w_smd, w_svd, w_rmd, w_rvd, b_dec, misc, eps):
    """Tiny MLP + fold into per-feature scale/shift.

    mean/std: (1, D).  Encoders (H, D) in native (out, in) layout; decoders
    pre-transposed to (H, D); b_se/b_re (1, H); b_dec/misc (4, D).
    Returns scale, shift with  out = x * scale + shift.
    Pure jnp/lax -> usable both inside a Pallas kernel and in plain JAX.
    """
    stats = jnp.concatenate([mean, std], axis=0)          # (2, D)
    dn = (((1,), (1,)), ((), ()))                          # contract lane dims
    h_s = jnp.maximum(
        lax.dot_general(stats, w_se, dn, preferred_element_type=jnp.float32)
        + b_se, 0.0)
    h_r = jnp.maximum(
        lax.dot_general(stats, w_re, dn, preferred_element_type=jnp.float32)
        + b_re, 0.0)

    asr_mean = jnp.dot(h_s[0:1, :], w_smd,
                       preferred_element_type=jnp.float32) + b_dec[0:1, :]
    asr_var = jnp.maximum(
        jnp.dot(h_s[1:2, :], w_svd,
                preferred_element_type=jnp.float32) + b_dec[1:2, :], 0.0)
    r_mean = jnp.tanh(
        jnp.dot(h_r[0:1, :], w_rmd,
                preferred_element_type=jnp.float32) + b_dec[2:3, :]) + misc[2:3, :]
    r_var = jax.nn.sigmoid(
        jnp.dot(h_r[1:2, :], w_rvd,
                preferred_element_type=jnp.float32) + b_dec[3:4, :]) + misc[3:4, :]

    lam1 = jax.nn.sigmoid(misc[0:1, :])
    lam2 = jax.nn.sigmoid(misc[1:2, :])
    mix_mean = lam1 * asr_mean + (1.0 - lam1) * mean
    mix_var = lam2 * asr_var + (1.0 - lam2) * std

    scale = r_var / (mix_var + eps)     # (1, D) only -> exact division is cheap
    shift = r_mean - mix_mean * scale
    return scale, shift


# --------------------------------------------------------------------------
# Fused single-pass kernel (x resident in VMEM): stats + MLP + apply
# --------------------------------------------------------------------------
def _fused_kernel(x_ref, w_se_ref, b_se_ref, w_re_ref, b_re_ref,
                  w_smd_ref, w_svd_ref, w_rmd_ref, w_rvd_ref,
                  b_dec_ref, misc_ref, o_ref, *, batch, eps):
    x = x_ref[...].astype(jnp.float32)                    # (B, Dp)
    bf = float(batch)
    mean = jnp.sum(x, axis=0, keepdims=True) * (1.0 / bf)
    centered = x - mean                                   # two-pass: no cancellation
    std = jnp.sqrt(jnp.sum(centered * centered, axis=0, keepdims=True)
                   * (1.0 / (bf - 1.0)))                  # unbiased (torch.std)

    scale, shift = _fold_scale_shift(
        mean, std, w_se_ref[...], b_se_ref[...], w_re_ref[...], b_re_ref[...],
        w_smd_ref[...], w_svd_ref[...], w_rmd_ref[...], w_rvd_ref[...],
        b_dec_ref[...], misc_ref[...], eps)

    o_ref[...] = (x * scale + shift).astype(o_ref.dtype)


# --------------------------------------------------------------------------
# Two-phase path, phase 1: per-chunk partial moments (sum, sum-of-squares)
# --------------------------------------------------------------------------
def _stats_kernel(x_ref, psum_ref, sum_sc, ssq_sc, *,
                  batch, tile_rows, tiles_per_chunk, num_tiles):
    c = pl.program_id(0)          # chunk axis ("parallel": v7x 2-TC sharding)
    i = pl.program_id(1)          # row-tile axis within chunk ("arbitrary")

    @pl.when(i == 0)
    def _init():
        sum_sc[...] = jnp.zeros_like(sum_sc)
        ssq_sc[...] = jnp.zeros_like(ssq_sc)

    x = x_ref[...].astype(jnp.float32)
    tile_idx = c * tiles_per_chunk + i

    def _accum(xv):
        sum_sc[...] += jnp.sum(xv, axis=0, keepdims=True)
        ssq_sc[...] += jnp.sum(xv * xv, axis=0, keepdims=True)

    if batch % tile_rows != 0:
        # Only the single, globally-last (partial) tile pays the mask cost.
        @pl.when(tile_idx < num_tiles - 1)
        def _full():
            _accum(x)

        @pl.when(tile_idx == num_tiles - 1)
        def _partial():
            row = (lax.broadcasted_iota(jnp.int32, x.shape, 0)
                   + tile_idx * tile_rows)
            _accum(jnp.where(row < batch, x, 0.0))
    else:
        _accum(x)

    @pl.when(i == tiles_per_chunk - 1)
    def _write():
        psum_ref[...] = jnp.concatenate(
            [sum_sc[...], ssq_sc[...]], axis=0)[None, :, :]     # (1, 2, Dp)


# --------------------------------------------------------------------------
# Two-phase path, phase 2: elementwise apply  out = x * scale + shift
# --------------------------------------------------------------------------
def _apply_kernel(x_ref, scale_ref, shift_ref, o_ref):
    # NOTE: rows of a partial final input block may hold undefined data; they
    # are only used elementwise and masked away on output writeback.
    x = x_ref[...].astype(jnp.float32)
    o_ref[...] = (x * scale_ref[...] + shift_ref[...]).astype(o_ref.dtype)


# --------------------------------------------------------------------------
# One-time parameter layout prep (outside the per-call hot path)
# --------------------------------------------------------------------------
def prepare_params(params):
    H, D = params["w_se"].shape
    D_pad = _round_up(D, 128)
    pad = D_pad - D

    def pad_d(a):                      # pad last (lane) dim to D_pad with zeros
        return jnp.pad(a, ((0, 0), (0, pad))) if pad else a

    return {
        "dim": D, "dim_padded": D_pad, "hidden": H,
        "w_se": pad_d(params["w_se"]),                  # (H, Dp), native (out,in)
        "b_se": params["b_se"].reshape(1, H),
        "w_re": pad_d(params["w_re"]),
        "b_re": params["b_re"].reshape(1, H),
        "w_smd": pad_d(params["w_smd"].T),              # (H, Dp), pre-transposed
        "w_svd": pad_d(params["w_svd"].T),
        "w_rmd": pad_d(params["w_rmd"].T),
        "w_rvd": pad_d(params["w_rvd"].T),
        "b_dec": pad_d(jnp.stack([params["b_smd"], params["b_svd"],
                                  params["b_rmd"], params["b_rvd"]], axis=0)),
        "misc": pad_d(jnp.stack([params["lambda_1"], params["lambda_2"],
                                 params["bias_1"], params["bias_2"]], axis=0)),
    }


# --------------------------------------------------------------------------
# Forward wrapper
# --------------------------------------------------------------------------
def asr_norm_bn(x, p, eps=1e-6, force_two_phase=False):
    """x: (B, D).  p: output of prepare_params()."""
    B, D = x.shape
    if B < 2:
        raise ValueError("ASRNormBN needs batch >= 2 (unbiased std uses B-1).")
    if D != p["dim"]:
        raise ValueError("feature dim mismatch with prepared params")

    D_pad, H = p["dim_padded"], p["hidden"]
    cap = _vmem_cap_bytes()
    eps = float(eps)

    # Lane-dense padding of x (no-op if D already a multiple of 128).
    x_pad = jnp.pad(x, ((0, 0), (0, D_pad - D))) if D_pad != D else x

    x_bytes = B * D_pad * 4
    weight_bytes = 4 * (6 * H * D_pad + 2 * H + 8 * D_pad)
    use_fused = (not force_two_phase) and (x_bytes <= min(8 << 20, cap // 6))

    if use_fused:
        # ---------------- fused single pass ----------------
        fused_vmem = min(cap, 4 * x_bytes + 2 * weight_bytes + (4 << 20))
        fused_cost = pl.CostEstimate(
            flops=int(10 * B * D_pad + 16 * H * D_pad + 40 * D_pad),
            transcendentals=int(4 * D_pad),
            bytes_accessed=int(2 * x_bytes + weight_bytes))

        def full(shape):
            return pl.BlockSpec(shape, lambda i: (0,) * len(shape))

        kern = functools.partial(_fused_kernel, batch=B, eps=eps)
        out_pad = pl.pallas_call(
            kern,
            out_shape=jax.ShapeDtypeStruct((B, D_pad), x.dtype),
            grid=(1,),
            in_specs=[
                full((B, D_pad)),
                full((H, D_pad)), full((1, H)),         # standard encoder
                full((H, D_pad)), full((1, H)),         # rescale encoder
                full((H, D_pad)), full((H, D_pad)),     # standard decoders
                full((H, D_pad)), full((H, D_pad)),     # rescale decoders
                full((4, D_pad)), full((4, D_pad)),     # biases / lambdas
            ],
            out_specs=full((B, D_pad)),
            compiler_params=pltpu.CompilerParams(
                dimension_semantics=("arbitrary",),
                vmem_limit_bytes=int(fused_vmem)),
            cost_estimate=fused_cost,
        )(x_pad, p["w_se"], p["b_se"], p["w_re"], p["b_re"],
          p["w_smd"], p["w_svd"], p["w_rmd"], p["w_rvd"],
          p["b_dec"], p["misc"])
    else:
        # ---------------- two-phase (stats kernel -> JAX fold -> apply) -----
        tb = _pick_tile_rows(B, D_pad, cap)
        nb = pl.cdiv(B, tb)
        nc = 2 if (nb >= 2 and nb % 2 == 0) else 1      # chunks (v7x 2-TC split)
        nt = nb // nc

        stats_vmem = min(cap, 2 * (2 * tb * D_pad * 4) + (4 << 20))
        apply_vmem = min(cap, 2 * (4 * tb * D_pad * 4) + (4 << 20))
        stats_cost = pl.CostEstimate(
            flops=int(3 * B * D_pad), transcendentals=0,
            bytes_accessed=int(x_bytes + nc * 2 * D_pad * 4))
        apply_cost = pl.CostEstimate(
            flops=int(2 * B * D_pad), transcendentals=0,
            bytes_accessed=int(2 * x_bytes + 8 * D_pad))

        stats_kern = functools.partial(
            _stats_kernel, batch=B, tile_rows=tb,
            tiles_per_chunk=nt, num_tiles=nb)

        partials = pl.pallas_call(
            stats_kern,
            out_shape=jax.ShapeDtypeStruct((nc, 2, D_pad), jnp.float32),
            grid=(nc, nt),
            in_specs=[pl.BlockSpec((tb, D_pad), lambda c, i: (c * nt + i, 0))],
            out_specs=pl.BlockSpec((1, 2, D_pad), lambda c, i: (c, 0, 0)),
            scratch_shapes=[pltpu.VMEM((1, D_pad), jnp.float32),
                            pltpu.VMEM((1, D_pad), jnp.float32)],
            compiler_params=pltpu.CompilerParams(
                dimension_semantics=("parallel", "arbitrary"),
                vmem_limit_bytes=int(stats_vmem)),
            cost_estimate=stats_cost,
        )(x_pad)

        # Combine chunk partials + tiny MLP + fold in plain JAX (hoisted).
        sums = jnp.sum(partials, axis=0)                   # (2, Dp)
        bf = float(B)
        mean = sums[0:1, :] * (1.0 / bf)
        var_num = jnp.maximum(sums[1:2, :] - bf * mean * mean, 0.0)
        std = jnp.sqrt(var_num * (1.0 / (bf - 1.0)))
        scale, shift = _fold_scale_shift(
            mean, std, p["w_se"], p["b_se"], p["w_re"], p["b_re"],
            p["w_smd"], p["w_svd"], p["w_rmd"], p["w_rvd"],
            p["b_dec"], p["misc"], eps)

        out_pad = pl.pallas_call(
            _apply_kernel,
            out_shape=jax.ShapeDtypeStruct((B, D_pad), x.dtype),
            grid=(nb,),
            in_specs=[pl.BlockSpec((tb, D_pad), lambda i: (i, 0)),
                      pl.BlockSpec((1, D_pad), lambda i: (0, 0)),
                      pl.BlockSpec((1, D_pad), lambda i: (0, 0))],
            out_specs=pl.BlockSpec((tb, D_pad), lambda i: (i, 0)),
            compiler_params=pltpu.CompilerParams(
                dimension_semantics=("parallel",),
                vmem_limit_bytes=int(apply_vmem)),
            cost_estimate=apply_cost,
        )(x_pad, scale, shift)

    return out_pad[:, :D] if D_pad != D else out_pad


# --------------------------------------------------------------------------
# Parameter init (PyTorch nn.Linear default init) and pure-JAX reference
# --------------------------------------------------------------------------
def init_params(key, dim, cop_dim=12):
    hidden = dim // cop_dim
    keys = jax.random.split(key, 12)

    def linear(kw, kb, fan_in, fan_out):
        bound = 1.0 / math.sqrt(fan_in)
        w = jax.random.uniform(kw, (fan_out, fan_in), jnp.float32, -bound, bound)
        b = jax.random.uniform(kb, (fan_out,), jnp.float32, -bound, bound)
        return w, b

    w_se, b_se = linear(keys[0], keys[1], dim, hidden)
    w_re, b_re = linear(keys[2], keys[3], dim, hidden)
    w_smd, b_smd = linear(keys[4], keys[5], hidden, dim)
    w_svd, b_svd = linear(keys[6], keys[7], hidden, dim)
    w_rmd, b_rmd = linear(keys[8], keys[9], hidden, dim)
    w_rvd, b_rvd = linear(keys[10], keys[11], hidden, dim)

    return {
        "w_se": w_se, "b_se": b_se, "w_re": w_re, "b_re": b_re,
        "w_smd": w_smd, "b_smd": b_smd, "w_svd": w_svd, "b_svd": b_svd,
        "w_rmd": w_rmd, "b_rmd": b_rmd, "w_rvd": w_rvd, "b_rvd": b_rvd,
        "lambda_1": jnp.zeros((dim,), jnp.float32) - 5.0,
        "lambda_2": jnp.zeros((dim,), jnp.float32) - 5.0,
        "bias_1": jnp.zeros((dim,), jnp.float32),
        "bias_2": jnp.zeros((dim,), jnp.float32),
    }


def asr_norm_bn_ref(x, params, eps=1e-6):
    """Pure-JAX reference mirroring the PyTorch forward (dropout = identity)."""
    relu = jax.nn.relu
    real_mean = jnp.mean(x, axis=0)
    real_std = jnp.std(x, axis=0, ddof=1)
    lam1 = jax.nn.sigmoid(params["lambda_1"])
    lam2 = jax.nn.sigmoid(params["lambda_2"])

    enc_m = relu(real_mean @ params["w_se"].T + params["b_se"])
    asr_mean = enc_m @ params["w_smd"].T + params["b_smd"]
    enc_v = relu(real_std @ params["w_se"].T + params["b_se"])
    asr_var = relu(enc_v @ params["w_svd"].T + params["b_svd"])

    mean = lam1 * asr_mean + (1 - lam1) * real_mean
    var = lam2 * asr_var + (1 - lam2) * real_std
    xn = (x - mean) / (var + eps)

    renc_m = relu(real_mean @ params["w_re"].T + params["b_re"])
    r_mean = jnp.tanh(renc_m @ params["w_rmd"].T + params["b_rmd"]) + params["bias_1"]
    renc_v = relu(real_std @ params["w_re"].T + params["b_re"])
    r_var = jax.nn.sigmoid(renc_v @ params["w_rvd"].T + params["b_rvd"]) + params["bias_2"]
    return xn * r_var + r_mean


if __name__ == "__main__":
    key = jax.random.PRNGKey(0)
    k1, k2, k3 = jax.random.split(key, 3)

    # Small demo (module-consistent shapes): fused single-pass path, D 48 -> 128.
    B, D, COP = 8, 48, 12            # hidden = D // COP = 4
    x = jax.random.normal(k1, (B, D), jnp.float32)
    params = init_params(k2, D, COP)
    prepped = prepare_params(params)           # one-time layout prep (+ D padding)
    out = jax.block_until_ready(asr_norm_bn(x, prepped))
    ref = asr_norm_bn_ref(x, params)
    assert out.shape == (B, D)
    assert jnp.allclose(out, ref, atol=2e-4, rtol=2e-4), "fused path mismatch"

    # Larger case exercising the two-phase tiled path (stats + apply kernels),
    # including the gated partial-tile mask and D padding (192 -> 256).
    B2, D2 = 2000, 192
    x2 = jax.random.normal(k3, (B2, D2), jnp.float32)
    params2 = init_params(jax.random.PRNGKey(1), D2, COP)
    prepped2 = prepare_params(params2)
    out2 = jax.block_until_ready(asr_norm_bn(x2, prepped2, force_two_phase=True))
    ref2 = asr_norm_bn_ref(x2, params2)
    assert out2.shape == (B2, D2)
    assert jnp.allclose(out2, ref2, atol=1e-3, rtol=1e-3), "two-phase path mismatch"

    print("KERNEL_OK")
</pallas_src>

<mosaic_0001>
module attributes {stable_mosaic.version = 11 : i64} {
  func.func @_fused_kernel(%arg0: i32, %arg1: memref<8x128xf32, #tpu.memory_space<vmem>>, %arg2: memref<4x128xf32, #tpu.memory_space<vmem>>, %arg3: memref<1x4xf32, #tpu.memory_space<vmem>>, %arg4: memref<4x128xf32, #tpu.memory_space<vmem>>, %arg5: memref<1x4xf32, #tpu.memory_space<vmem>>, %arg6: memref<4x128xf32, #tpu.memory_space<vmem>>, %arg7: memref<4x128xf32, #tpu.memory_space<vmem>>, %arg8: memref<4x128xf32, #tpu.memory_space<vmem>>, %arg9: memref<4x128xf32, #tpu.memory_space<vmem>>, %arg10: memref<4x128xf32, #tpu.memory_space<vmem>>, %arg11: memref<4x128xf32, #tpu.memory_space<vmem>>, %arg12: memref<8x128xf32, #tpu.memory_space<vmem>>) attributes {dimension_semantics = [#tpu.dimension_semantics<arbitrary>], iteration_bounds = array<i64: 1>, scalar_prefetch = 0 : i64, scratch_operands = 0 : i64, tpu.core_type = #tpu.core_type<tc>, window_params = [{pipeline_mode = #tpu.pipeline_mode<synchronous>, transform_indices = @transform_0, window_bounds = array<i64: 8, 128>}, {pipeline_mode = #tpu.pipeline_mode<synchronous>, transform_indices = @transform_1, window_bounds = array<i64: 4, 128>}, {pipeline_mode = #tpu.pipeline_mode<synchronous>, transform_indices = @transform_2, window_bounds = array<i64: 1, 4>}, {pipeline_mode = #tpu.pipeline_mode<synchronous>, transform_indices = @transform_3, window_bounds = array<i64: 4, 128>}, {pipeline_mode = #tpu.pipeline_mode<synchronous>, transform_indices = @transform_4, window_bounds = array<i64: 1, 4>}, {pipeline_mode = #tpu.pipeline_mode<synchronous>, transform_indices = @transform_5, window_bounds = array<i64: 4, 128>}, {pipeline_mode = #tpu.pipeline_mode<synchronous>, transform_indices = @transform_6, window_bounds = array<i64: 4, 128>}, {pipeline_mode = #tpu.pipeline_mode<synchronous>, transform_indices = @transform_7, window_bounds = array<i64: 4, 128>}, {pipeline_mode = #tpu.pipeline_mode<synchronous>, transform_indices = @transform_8, window_bounds = array<i64: 4, 128>}, {pipeline_mode = #tpu.pipeline_mode<synchronous>, transform_indices = @transform_9, window_bounds = array<i64: 4, 128>}, {pipeline_mode = #tpu.pipeline_mode<synchronous>, transform_indices = @transform_10, window_bounds = array<i64: 4, 128>}, {pipeline_mode = #tpu.pipeline_mode<synchronous>, transform_indices = @transform_11, window_bounds = array<i64: 8, 128>}]} {
    %c0 = arith.constant 0 : index
    %c0_0 = arith.constant 0 : index
    %0 = vector.load %arg1[%c0, %c0_0] : memref<8x128xf32, #tpu.memory_space<vmem>>, vector<8x128xf32>
    %cst = arith.constant dense<0.000000e+00> : vector<128xf32>
    %1 = vector.multi_reduction <add>, %0, %cst [0] : vector<8x128xf32> to vector<128xf32>
    %2 = vector.shape_cast %1 : vector<128xf32> to vector<1x128xf32>
    %cst_1 = arith.constant 1.250000e-01 : f32
    %3 = vector.broadcast %cst_1 : f32 to vector<1x128xf32>
    %4 = arith.mulf %2, %3 : vector<1x128xf32>
    %5 = vector.broadcast %4 : vector<1x128xf32> to vector<8x128xf32>
    %6 = arith.subf %0, %5 : vector<8x128xf32>
    %7 = arith.mulf %6, %6 : vector<8x128xf32>
    %cst_2 = arith.constant dense<0.000000e+00> : vector<128xf32>
    %8 = vector.multi_reduction <add>, %7, %cst_2 [0] : vector<8x128xf32> to vector<128xf32>
    %9 = vector.shape_cast %8 : vector<128xf32> to vector<1x128xf32>
    %cst_3 = arith.constant 0.142857149 : f32
    %10 = vector.broadcast %cst_3 : f32 to vector<1x128xf32>
    %11 = arith.mulf %9, %10 : vector<1x128xf32>
    %12 = math.sqrt %11 : vector<1x128xf32>
    %c0_4 = arith.constant 0 : index
    %c0_5 = arith.constant 0 : index
    %13 = vector.load %arg2[%c0_4, %c0_5] : memref<4x128xf32, #tpu.memory_space<vmem>>, vector<4x128xf32>
    %c0_6 = arith.constant 0 : index
    %c0_7 = arith.constant 0 : index
    %14 = vector.load %arg3[%c0_6, %c0_7] : memref<1x4xf32, #tpu.memory_space<vmem>>, vector<1x4xf32>
    %c0_8 = arith.constant 0 : index
    %c0_9 = arith.constant 0 : index
    %15 = vector.load %arg4[%c0_8, %c0_9] : memref<4x128xf32, #tpu.memory_space<vmem>>, vector<4x128xf32>
    %c0_10 = arith.constant 0 : index
    %c0_11 = arith.constant 0 : index
    %16 = vector.load %arg5[%c0_10, %c0_11] : memref<1x4xf32, #tpu.memory_space<vmem>>, vector<1x4xf32>
    %c0_12 = arith.constant 0 : index
    %c0_13 = arith.constant 0 : index
    %17 = vector.load %arg6[%c0_12, %c0_13] : memref<4x128xf32, #tpu.memory_space<vmem>>, vector<4x128xf32>
    %c0_14 = arith.constant 0 : index
    %c0_15 = arith.constant 0 : index
    %18 = vector.load %arg7[%c0_14, %c0_15] : memref<4x128xf32, #tpu.memory_space<vmem>>, vector<4x128xf32>
    %c0_16 = arith.constant 0 : index
    %c0_17 = arith.constant 0 : index
    %19 = vector.load %arg8[%c0_16, %c0_17] : memref<4x128xf32, #tpu.memory_space<vmem>>, vector<4x128xf32>
    %c0_18 = arith.constant 0 : index
    %c0_19 = arith.constant 0 : index
    %20 = vector.load %arg9[%c0_18, %c0_19] : memref<4x128xf32, #tpu.memory_space<vmem>>, vector<4x128xf32>
    %c0_20 = arith.constant 0 : index
    %c0_21 = arith.constant 0 : index
    %21 = vector.load %arg10[%c0_20, %c0_21] : memref<4x128xf32, #tpu.memory_space<vmem>>, vector<4x128xf32>
    %c0_22 = arith.constant 0 : index
    %c0_23 = arith.constant 0 : index
    %22 = vector.load %arg11[%c0_22, %c0_23] : memref<4x128xf32, #tpu.memory_space<vmem>>, vector<4x128xf32>
    %23 = tpu.concatenate %4, %12 in 0 : vector<1x128xf32>, vector<1x128xf32> -> vector<2x128xf32>
    %cst_24 = arith.constant dense<0.000000e+00> : vector<2x4xf32>
    %24 = tpu.matmul %23, %13, %cst_24 {dimension_numbers = #tpu.dot_dimension_numbers<[1], [1], [0], [0], [0, 0, 1, 0], [], []>} : vector<2x128xf32>, vector<4x128xf32>, vector<2x4xf32> -> vector<2x4xf32>
    %25 = vector.broadcast %14 : vector<1x4xf32> to vector<2x4xf32>
    %26 = arith.addf %24, %25 : vector<2x4xf32>
    %cst_25 = arith.constant 0.000000e+00 : f32
    %27 = vector.broadcast %cst_25 : f32 to vector<2x4xf32>
    %28 = arith.maximumf %26, %27 : vector<2x4xf32>
    %cst_26 = arith.constant dense<0.000000e+00> : vector<2x4xf32>
    %29 = tpu.matmul %23, %15, %cst_26 {dimension_numbers = #tpu.dot_dimension_numbers<[1], [1], [0], [0], [0, 0, 1, 0], [], []>} : vector<2x128xf32>, vector<4x128xf32>, vector<2x4xf32> -> vector<2x4xf32>
    %30 = vector.broadcast %16 : vector<1x4xf32> to vector<2x4xf32>
    %31 = arith.addf %29, %30 : vector<2x4xf32>
    %cst_27 = arith.constant 0.000000e+00 : f32
    %32 = vector.broadcast %cst_27 : f32 to vector<2x4xf32>
    %33 = arith.maximumf %31, %32 : vector<2x4xf32>
    %34 = vector.extract_strided_slice %28 {offsets = [0, 0], sizes = [1, 4], strides = [1, 1]} : vector<2x4xf32> to vector<1x4xf32>
    %cst_28 = arith.constant dense<0.000000e+00> : vector<1x128xf32>
    %35 = tpu.matmul %34, %17, %cst_28 {dimension_numbers = #tpu.dot_dimension_numbers<[1], [0], [0], [1], [0, 0, 1, 1], [], []>} : vector<1x4xf32>, vector<4x128xf32>, vector<1x128xf32> -> vector<1x128xf32>
    %36 = vector.extract_strided_slice %21 {offsets = [0, 0], sizes = [1, 128], strides = [1, 1]} : vector<4x128xf32> to vector<1x128xf32>
    %37 = arith.addf %35, %36 : vector<1x128xf32>
    %38 = vector.extract_strided_slice %28 {offsets = [1, 0], sizes = [1, 4], strides = [1, 1]} : vector<2x4xf32> to vector<1x4xf32>
    %cst_29 = arith.constant dense<0.000000e+00> : vector<1x128xf32>
    %39 = tpu.matmul %38, %18, %cst_29 {dimension_numbers = #tpu.dot_dimension_numbers<[1], [0], [0], [1], [0, 0, 1, 1], [], []>} : vector<1x4xf32>, vector<4x128xf32>, vector<1x128xf32> -> vector<1x128xf32>
    %40 = vector.extract_strided_slice %21 {offsets = [1, 0], sizes = [1, 128], strides = [1, 1]} : vector<4x128xf32> to vector<1x128xf32>
    %41 = arith.addf %39, %40 : vector<1x128xf32>
    %cst_30 = arith.constant 0.000000e+00 : f32
    %42 = vector.broadcast %cst_30 : f32 to vector<1x128xf32>
    %43 = arith.maximumf %41, %42 : vector<1x128xf32>
    %44 = vector.extract_strided_slice %33 {offsets = [0, 0], sizes = [1, 4], strides = [1, 1]} : vector<2x4xf32> to vector<1x4xf32>
    %cst_31 = arith.constant dense<0.000000e+00> : vector<1x128xf32>
    %45 = tpu.matmul %44, %19, %cst_31 {dimension_numbers = #tpu.dot_dimension_numbers<[1], [0], [0], [1], [0, 0, 1, 1], [], []>} : vector<1x4xf32>, vector<4x128xf32>, vector<1x128xf32> -> vector<1x128xf32>
    %46 = vector.extract_strided_slice %21 {offsets = [2, 0], sizes = [1, 128], strides = [1, 1]} : vector<4x128xf32> to vector<1x128xf32>
    %47 = arith.addf %45, %46 : vector<1x128xf32>
    %48 = math.tanh %47 : vector<1x128xf32>
    %49 = vector.extract_strided_slice %22 {offsets = [2, 0], sizes = [1, 128], strides = [1, 1]} : vector<4x128xf32> to vector<1x128xf32>
    %50 = arith.addf %48, %49 : vector<1x128xf32>
    %51 = vector.extract_strided_slice %33 {offsets = [1, 0], sizes = [1, 4], strides = [1, 1]} : vector<2x4xf32> to vector<1x4xf32>
    %cst_32 = arith.constant dense<0.000000e+00> : vector<1x128xf32>
    %52 = tpu.matmul %51, %20, %cst_32 {dimension_numbers = #tpu.dot_dimension_numbers<[1], [0], [0], [1], [0, 0, 1, 1], [], []>} : vector<1x4xf32>, vector<4x128xf32>, vector<1x128xf32> -> vector<1x128xf32>
    %53 = vector.extract_strided_slice %21 {offsets = [3, 0], sizes = [1, 128], strides = [1, 1]} : vector<4x128xf32> to vector<1x128xf32>
    %54 = arith.addf %52, %53 : vector<1x128xf32>
    %55 = arith.negf %54 : vector<1x128xf32>
    %56 = math.exp %55 : vector<1x128xf32>
    %cst_33 = arith.constant 1.000000e+00 : f32
    %57 = vector.broadcast %cst_33 : f32 to vector<1x128xf32>
    %58 = arith.addf %57, %56 : vector<1x128xf32>
    %59 = arith.divf %57, %58 : vector<1x128xf32>
    %60 = vector.extract_strided_slice %22 {offsets = [3, 0], sizes = [1, 128], strides = [1, 1]} : vector<4x128xf32> to vector<1x128xf32>
    %61 = arith.addf %59, %60 : vector<1x128xf32>
    %62 = vector.extract_strided_slice %22 {offsets = [0, 0], sizes = [1, 128], strides = [1, 1]} : vector<4x128xf32> to vector<1x128xf32>
    %63 = arith.negf %62 : vector<1x128xf32>
    %64 = math.exp %63 : vector<1x128xf32>
    %cst_34 = arith.constant 1.000000e+00 : f32
    %65 = vector.broadcast %cst_34 : f32 to vector<1x128xf32>
    %66 = arith.addf %65, %64 : vector<1x128xf32>
    %67 = arith.divf %65, %66 : vector<1x128xf32>
    %68 = vector.extract_strided_slice %22 {offsets = [1, 0], sizes = [1, 128], strides = [1, 1]} : vector<4x128xf32> to vector<1x128xf32>
    %69 = arith.negf %68 : vector<1x128xf32>
    %70 = math.exp %69 : vector<1x128xf32>
    %cst_35 = arith.constant 1.000000e+00 : f32
    %71 = vector.broadcast %cst_35 : f32 to vector<1x128xf32>
    %72 = arith.addf %71, %70 : vector<1x128xf32>
    %73 = arith.divf %71, %72 : vector<1x128xf32>
    %74 = arith.mulf %67, %37 : vector<1x128xf32>
    %cst_36 = arith.constant 1.000000e+00 : f32
    %75 = vector.broadcast %cst_36 : f32 to vector<1x128xf32>
    %76 = arith.subf %75, %67 : vector<1x128xf32>
    %77 = arith.mulf %76, %4 : vector<1x128xf32>
    %78 = arith.addf %74, %77 : vector<1x128xf32>
    %79 = arith.mulf %73, %43 : vector<1x128xf32>
    %cst_37 = arith.constant 1.000000e+00 : f32
    %80 = vector.broadcast %cst_37 : f32 to vector<1x128xf32>
    %81 = arith.subf %80, %73 : vector<1x128xf32>
    %82 = arith.mulf %81, %12 : vector<1x128xf32>
    %83 = arith.addf %79, %82 : vector<1x128xf32>
    %cst_38 = arith.constant 9.99999997E-7 : f32
    %84 = vector.broadcast %cst_38 : f32 to vector<1x128xf32>
    %85 = arith.addf %83, %84 : vector<1x128xf32>
    %86 = arith.divf %61, %85 : vector<1x128xf32>
    %87 = arith.mulf %78, %86 : vector<1x128xf32>
    %88 = arith.subf %50, %87 : vector<1x128xf32>
    %89 = vector.broadcast %86 : vector<1x128xf32> to vector<8x128xf32>
    %90 = arith.mulf %0, %89 : vector<8x128xf32>
    %91 = vector.broadcast %88 : vector<1x128xf32> to vector<8x128xf32>
    %92 = arith.addf %90, %91 : vector<8x128xf32>
    %c0_39 = arith.constant 0 : index
    %c0_40 = arith.constant 0 : index
    %93 = vector.load %arg12[%c0_39, %c0_40] : memref<8x128xf32, #tpu.memory_space<vmem>>, vector<8x128xf32>
    tpu.vector_store %arg12[%c0_39, %c0_40], %92 {strides = array<i32>} : memref<8x128xf32, #tpu.memory_space<vmem>>, vector<8x128xf32>,
    return
  }
  func.func @transform_0(%arg0: i32) -> (i32, i32) {
    %c0_i32 = arith.constant 0 : i32
    %c0_i32_0 = arith.constant 0 : i32
    %c0_i32_1 = arith.constant 0 : i32
    return %c0_i32, %c0_i32_0 : i32, i32
  }
  func.func @transform_1(%arg0: i32) -> (i32, i32) {
    %c0_i32 = arith.constant 0 : i32
    %c0_i32_0 = arith.constant 0 : i32
    %c0_i32_1 = arith.constant 0 : i32
    return %c0_i32, %c0_i32_0 : i32, i32
  }
  func.func @transform_2(%arg0: i32) -> (i32, i32) {
    %c0_i32 = arith.constant 0 : i32
    %c0_i32_0 = arith.constant 0 : i32
    %c0_i32_1 = arith.constant 0 : i32
    return %c0_i32, %c0_i32_0 : i32, i32
  }
  func.func @transform_3(%arg0: i32) -> (i32, i32) {
    %c0_i32 = arith.constant 0 : i32
    %c0_i32_0 = arith.constant 0 : i32
    %c0_i32_1 = arith.constant 0 : i32
    return %c0_i32, %c0_i32_0 : i32, i32
  }
  func.func @transform_4(%arg0: i32) -> (i32, i32) {
    %c0_i32 = arith.constant 0 : i32
    %c0_i32_0 = arith.constant 0 : i32
    %c0_i32_1 = arith.constant 0 : i32
    return %c0_i32, %c0_i32_0 : i32, i32
  }
  func.func @transform_5(%arg0: i32) -> (i32, i32) {
    %c0_i32 = arith.constant 0 : i32
    %c0_i32_0 = arith.constant 0 : i32
    %c0_i32_1 = arith.constant 0 : i32
    return %c0_i32, %c0_i32_0 : i32, i32
  }
  func.func @transform_6(%arg0: i32) -> (i32, i32) {
    %c0_i32 = arith.constant 0 : i32
    %c0_i32_0 = arith.constant 0 : i32
    %c0_i32_1 = arith.constant 0 : i32
    return %c0_i32, %c0_i32_0 : i32, i32
  }
  func.func @transform_7(%arg0: i32) -> (i32, i32) {
    %c0_i32 = arith.constant 0 : i32
    %c0_i32_0 = arith.constant 0 : i32
    %c0_i32_1 = arith.constant 0 : i32
    return %c0_i32, %c0_i32_0 : i32, i32
  }
  func.func @transform_8(%arg0: i32) -> (i32, i32) {
    %c0_i32 = arith.constant 0 : i32
    %c0_i32_0 = arith.constant 0 : i32
    %c0_i32_1 = arith.constant 0 : i32
    return %c0_i32, %c0_i32_0 : i32, i32
  }
  func.func @transform_9(%arg0: i32) -> (i32, i32) {
    %c0_i32 = arith.constant 0 : i32
    %c0_i32_0 = arith.constant 0 : i32
    %c0_i32_1 = arith.constant 0 : i32
    return %c0_i32, %c0_i32_0 : i32, i32
  }
  func.func @transform_10(%arg0: i32) -> (i32, i32) {
    %c0_i32 = arith.constant 0 : i32
    %c0_i32_0 = arith.constant 0 : i32
    %c0_i32_1 = arith.constant 0 : i32
    return %c0_i32, %c0_i32_0 : i32, i32
  }
  func.func @transform_11(%arg0: i32) -> (i32, i32) {
    %c0_i32 = arith.constant 0 : i32
    %c0_i32_0 = arith.constant 0 : i32
    %c0_i32_1 = arith.constant 0 : i32
    return %c0_i32, %c0_i32_0 : i32, i32
  }
}

</mosaic_0001>

<bundles_post_ra>
// kernel: tpu_custom_call.1
= control target key start
LH: loop header
LB: loop body
LE: loop exit
PB: predicated region body
PF: predicated region fallthrough
CT: control target
= control target key end

     0   :  { %16 = vsyncpa [#allocation3], 0  ;;  %s1078_s0 = inlined_call_operand.hbm [shape: f32[8,128], index: 0, kind: input, shape index: {}]   ;;  %s1079_s1 = inlined_call_operand.hbm [shape: f32[4,128], index: 1, kind: input, shape index: {}]   ;;  %s1080_s2 = inlined_call_operand.hbm [shape: f32[1,4], index: 2, kind: input, shape index: {}]   ;;  %s1081_s3 = inlined_call_operand.vmem [shape: f32[4,128], index: 3, kind: input, shape index: {}]   ;;  %s1082_s4 = inlined_call_operand.hbm [shape: f32[1,4], index: 4, kind: input, shape index: {}]   ;;  %s1083_s5 = inlined_call_operand.vmem [shape: f32[4,128], index: 5, kind: input, shape index: {}]   ;;  %s1084_s6 = inlined_call_operand.hbm [shape: f32[4,128], index: 6, kind: input, shape index: {}]   ;;  %s1085_s7 = inlined_call_operand.vmem [shape: f32[4,128], index: 7, kind: input, shape index: {}]   ;;  %s1086_s8 = inlined_call_operand.hbm [shape: f32[4,128], index: 8, kind: input, shape index: {}]   ;;  %s1087_s9 = inlined_call_operand.vmem [shape: f32[4,128], index: 9, kind: input, shape index: {}]   ;;  %s1088_s10 = inlined_call_operand.hbm [shape: f32[4,128], index: 10, kind: input, shape index: {}]   ;;  %s1089_s11 = inlined_call_operand.hbm [shape: f32[8,128], index: 11, kind: output, shape index: {}]  }
   0x1   :  { %17 = vsyncpa [#allocation6], 0 }
   0x2   :  { %18 = vsyncpa [#allocation9], 0 }
   0x3   :  { %19 = vsyncpa [#allocation12], 0 }
   0x4   :  { %20 = vsyncpa [#allocation4], 0  ;;  %s939_s17 = smov [#allocation5]   ;;  %s940_s19 = smov [#allocation8]  }
   0x5   :  { %s37_s18 = sshll.u32 %s939_s17, 4  ;;  %s59_s20 = sshll.u32 %s940_s19, 4  ;;  %s38_s18 = int_to_ptr.vmem [resolvable:$true] %s37_s18  ;;  %s60_s20 = int_to_ptr.vmem [resolvable:$true] %s59_s20 }
   0x6   :  { %s777_s21 = scalar_lea.vmem %s38_s18, 64  ;;  %p782_p1 = scmp.lt.s32.totalorder %s38_s18, %s38_s18 }
   0x7   :  { %p778_p0 = scmp.ne.s32.totalorder %s38_s18, %s777_s21  ;;  %p783_p2 = scmp.lt.s32.totalorder %s777_s21, %s777_s21 }
   0x9   :  { %p784_p3 = por %p783_p2, %p782_p1 }
   0xb   :  { %p785_p4 = pnand %p784_p3, %p778_p0 }
   0xd   :  { %788 = shalt.err (!%p785_p4)
}
   0xe   :  { %40 = dma.hbm_to_vmem [thread:$0]  %s1079_s1, 64, %s38_s18, [#allocation6]  }
   0xf   :  { %s797_s24 = scalar_lea.vmem %s60_s20, 16  ;;  %s801_s25 = scalar_lea.vmem %s60_s20, 32 }
  0x10   :  { %p798_p5 = scmp.ne.s32.totalorder %s60_s20, %s797_s24  ;;  %p802_p6 = scmp.lt.s32.totalorder %s60_s20, %s60_s20 }
  0x11   :  { %p803_p7 = scmp.lt.s32.totalorder %s801_s25, %s797_s24 }
  0x13   :  { %p804_p8 = por %p803_p7, %p802_p6 }
  0x15   :  { %p805_p9 = pnand %p804_p8, %p798_p5 }
  0x17   :  { %808 = shalt.err (!%p805_p9)
}
  0x18   :  { %62 = dma.hbm_to_vmem [thread:$0]  %s1082_s4, 16, %s60_s20, [#allocation9]  }
  0x19   :  { %s941_s28 = smov [#allocation11]   ;;  %s942_s30 = smov [#allocation2]  }
  0x1a   :  { %s83_s29 = sshll.u32 %s941_s28, 4  ;;  %s27_s12 = sshll.u32 %s942_s30, 4  ;;  %s84_s29 = int_to_ptr.vmem [resolvable:$true] %s83_s29  ;;  %s28_s12 = int_to_ptr.vmem [resolvable:$true] %s27_s12 }
  0x1b   :  { %s817_s13 = scalar_lea.vmem %s84_s29, 64  ;;  %p822_p11 = scmp.lt.s32.totalorder %s84_s29, %s84_s29 }
  0x1c   :  { %p818_p10 = scmp.ne.s32.totalorder %s84_s29, %s817_s13  ;;  %p823_p12 = scmp.lt.s32.totalorder %s817_s13, %s817_s13 }
  0x1e   :  { %p824_p13 = por %p823_p12, %p822_p11 }
  0x20   :  { %p825_p0 = pnand %p824_p13, %p818_p10 }
  0x22   :  { %828 = shalt.err (!%p825_p0)
}
  0x23   :  { %86 = dma.hbm_to_vmem [thread:$0]  %s1086_s8, 64, %s84_s29, [#allocation12]  }
  0x24   :  { %s837_s15 = scalar_lea.vmem %s28_s12, 128  ;;  %p842_p2 = scmp.lt.s32.totalorder %s28_s12, %s28_s12 }
  0x25   :  { %p838_p1 = scmp.ne.s32.totalorder %s28_s12, %s837_s15  ;;  %p843_p3 = scmp.lt.s32.totalorder %s837_s15, %s837_s15 }
  0x27   :  { %p844_p4 = por %p843_p3, %p842_p2 }
  0x29   :  { %p845_p5 = pnand %p844_p4, %p838_p1 }
  0x2b   :  { %848 = shalt.err (!%p845_p5)
}
  0x2c   :  { %30 = dma.hbm_to_vmem [thread:$0]  %s1078_s0, 128, %s28_s12, [#allocation3]  }
  0x2d   :  { %s943_s17 = smov [#allocation7]   ;;  %s944_s19 = smov [#allocation10]  }
  0x2e   :  { %s47_s18 = sshll.u32 %s943_s17, 4  ;;  %s71_s20 = sshll.u32 %s944_s19, 4  ;;  %s48_s18 = int_to_ptr.vmem [resolvable:$true] %s47_s18  ;;  %s72_s20 = int_to_ptr.vmem [resolvable:$true] %s71_s20 }
  0x2f   :  { %s857_s21 = scalar_lea.vmem %s48_s18, 16  ;;  %s861_s8 = scalar_lea.vmem %s48_s18, 32 }
  0x30   :  { %p858_p6 = scmp.ne.s32.totalorder %s48_s18, %s857_s21  ;;  %p862_p7 = scmp.lt.s32.totalorder %s48_s18, %s48_s18 }
  0x31   :  { %p863_p8 = scmp.lt.s32.totalorder %s861_s8, %s857_s21 }
  0x33   :  { %p864_p9 = por %p863_p8, %p862_p7 }
  0x35   :  { %p865_p10 = pnand %p864_p9, %p858_p6 }
  0x37   :  { %868 = shalt.err (!%p865_p10)
}
  0x38   :  { %50 = dma.hbm_to_vmem [thread:$0]  %s1080_s2, 16, %s48_s18, [#allocation6]  }
  0x39   :  { %s877_s24 = scalar_lea.vmem %s72_s20, 64  ;;  %p882_p12 = scmp.lt.s32.totalorder %s72_s20, %s72_s20 }
  0x3a   :  { %p878_p11 = scmp.ne.s32.totalorder %s72_s20, %s877_s24  ;;  %p883_p13 = scmp.lt.s32.totalorder %s877_s24, %s877_s24 }
  0x3c   :  { %p884_p0 = por %p883_p13, %p882_p12 }
  0x3e   :  { %p885_p1 = pnand %p884_p0, %p878_p11 }
  0x40   :  { %888 = shalt.err (!%p885_p1)
}
  0x41   :  { %74 = dma.hbm_to_vmem [thread:$0]  %s1084_s6, 64, %s72_s20, [#allocation9]  }
  0x42   :  { %s945_s26 = smov [#allocation13]  }
  0x43   :  { %s95_s27 = sshll.u32 %s945_s26, 4  ;;  %s96_s27 = int_to_ptr.vmem [resolvable:$true] %s95_s27 }
  0x44   :  { %s897_s28 = scalar_lea.vmem %s96_s27, 64  ;;  %p902_p3 = scmp.lt.s32.totalorder %s96_s27, %s96_s27 }
  0x45   :  { %p898_p2 = scmp.ne.s32.totalorder %s96_s27, %s897_s28  ;;  %p903_p4 = scmp.lt.s32.totalorder %s897_s28, %s897_s28 }
  0x47   :  { %p904_p5 = por %p903_p4, %p902_p3 }
  0x49   :  { %p905_p6 = pnand %p904_p5, %p898_p2 }
  0x4b   :  { %908 = shalt.err (!%p905_p6)
}
  0x4c   :  { %98 = dma.hbm_to_vmem [thread:$0]  %s1088_s10, 64, %s96_s27, [#allocation12]  }
  0x4d   :  { %929 = dma.done.wait [#allocation3], 128  }
  0x4e   :  { %930 = vsyncadd [#allocation3], 4294967168 }
  0x4f   :  { %931 = dma.done.wait [#allocation6], 80  }
  0x50   :  { %932 = vsyncadd [#allocation6], 4294967216 }
  0x51   :  { %933 = dma.done.wait [#allocation9], 80  }
  0x52   :  { %934 = vsyncadd [#allocation9], 4294967216 }
  0x53   :  { %935 = dma.done.wait [#allocation12], 128  }
  0x54   :  { %936 = vsyncadd [#allocation12], 4294967168  ;;  %v946_v0 = vmov 0.0   ;;  %vm947_vm0 = vmmov 0   ;;  %v144_v1 = vld [vmem:[#allocation5] sm:$0xf] }
  0x55   :  { %715 = vmatprep.subr.mxu0 %v946_v0  ;;  %720 = vmatprep.subr.mxu1 %v946_v0  ;;  %v146_v2 = vld [vmem:[%s1081_s3] sm:$0xf]  ;;  %vm154_vm3 = vcmask 1040384   ;;  %vm314_vm4 = vcmask 1043456   ;;  %v149_v27 = vld [vmem:[#allocation10] sm:$0xf] }
  0x56   :  { %717 = vmatprep.mubr.msk.f32.mxu0 %vm947_vm0, %v946_v0  ;;  %722 = vmatprep.mubr.msk.f32.mxu1 %vm947_vm0, %v946_v0  ;;  %v1039_v3 = vld [vmem:[#allocation2] sm:$0xff]  ;;  %v691_v28 = vld [vmem:[#allocation7] ss:$0 sm:$0xff]  ;;  %v692_v29 = vld [vmem:[#allocation8] ss:$0 sm:$0xff]  ;;  %vm310_vm5 = vcmask 31744  }
  0x57   :  { %716 = vmatpush3.xpose.msra.mxu0 %v144_v1  ;;  %721 = vmatpush3.xpose.msra.mxu1 %v146_v2  ;;  %v121_v4 = vrot.slane %v1039_v3, 4  ;;  %v148_v26 = vld [vmem:[%s1083_s5] sm:$0xf]  ;;  %v151_v40 = vld [vmem:[#allocation11] sm:$0xf] }
  0x58   :  { %730 = vmatprep.subr.mxu1 %v946_v0  ;;  %725 = vmatprep.subr.mxu0 %v946_v0  ;;  %v150_v38 = vld [vmem:[%s1085_s7] sm:$0xf]  ;;  %v153_v42 = vld [vmem:[#allocation13] sm:$0xf] }
  0x59   :  { %v122_v5 = vadd.f32 %v121_v4, %v1039_v3  ;;  %v702_v43 = vmul.f32 -1.442695, %v153_v42  ;;  %v152_v46 = vld [vmem:[%s1087_s9] sm:$0xf]  ;;  %s948_s9 = smov [#allocation14]  }
  0x5a   :  { %v390_v47 = vrot.slane %v152_v46, 1  ;;  %v552_v52 = vrot.slane %v152_v46, 3  ;;  %v468_v4 = vrot.slane %v152_v46, 2  ;;  %s679_s1 = sshll.u32 %s948_s9, 4  ;;  %s680_s1 = int_to_ptr.vmem [resolvable:$true] %s679_s1 }
  0x5b   :  { %v123_v6 = vrot.slane %v122_v5, 2  ;;  %s909_s14 = scalar_lea.vmem %s680_s1, 128  ;;  %p914_p8 = scmp.lt.s32.totalorder %s680_s1, %s680_s1 }
  0x5c   :  { %p910_p7 = scmp.ne.s32.totalorder %s680_s1, %s909_s14  ;;  %p915_p9 = scmp.lt.s32.totalorder %s909_s14, %s909_s14 }
  0x5d   :  { %v124_v7 = vadd.f32 %v123_v6, %v122_v5 }
  0x5e   :  { %p916_p10 = por %p915_p9, %p914_p8 }
  0x5f   :  { %v125_v8 = vrot.slane %v124_v7, 1 }
  0x60   :  { %p917_p11 = pnand %p916_p10, %p910_p7 }
  0x61   :  { %v126_v9 = vadd.f32 %v125_v8, %v124_v7 }
  0x63   :  { %v1045_v10 = vmul.f32 0.125, %v126_v9 }
  0x65   :  { %v128_v11 = vsub.f32 %v1039_v3, %v1045_v10 }
  0x67   :  { %v129_v12 = vmul.f32 %v128_v11, %v128_v11  ;;  %v662_v11 = vlaneseq }
  0x69   :  { %v130_v13 = vrot.slane %v129_v12, 4 }
  0x6b   :  { %v131_v14 = vadd.f32 %v130_v13, %v129_v12  ;;  %v635_v13 = vrot.slane %v153_v42, 3 }
  0x6d   :  { %v132_v15 = vrot.slane %v131_v14, 2 }
  0x6f   :  { %v133_v16 = vadd.f32 %v132_v15, %v131_v14  ;;  %v663_v14 = vshrl.u32 %v662_v11, 7 }
  0x71   :  { %v134_v17 = vrot.slane %v133_v16, 1 }
  0x73   :  { %v135_v18 = vadd.f32 %v134_v17, %v133_v16 }
  0x75   :  { %v136_v19 = vmul.f32 0.14285715, %v135_v18 }
  0x77   :  { %755 = vrsqrt.f32 %v136_v19  ;;  %vm139_vm1 = vcmp.eq.f32.partialorder %v136_v19, inf  ;;  %v142_v21 = vand.u32 2147483648, %v136_v19  ;;  %vm141_vm2 = vcmp.eq.f32.partialorder %v136_v19, 0.0 }
  0x78   :  { %757 = vpow2.f32 %v702_v43 }
  0x84   :  { %v756_v20 = vpop.eup %755 }
  0x85   :  { %v138_v22 = vmul.f32 %v756_v20, %v136_v19  ;;  %v758_v44 = vpop.eup %757 }
  0x86   :  { %v641_v45 = vadd.f32 1.0, %v758_v44 }
  0x87   :  { %v140_v23 = vsel %vm139_vm1, %v136_v19, %v138_v22  ;;  %v548_v19 = vrot.slane %v153_v42, 2 }
  0x88   :  { %v143_v24 = vsel %vm141_vm2, %v142_v21, %v140_v23  ;;  %759 = vrcp.f32 %v641_v45  ;;  %v664_v21 = vsub.s32 0, %v663_v14 }
  0x89   :  { %v155_v25 = vsel %vm154_vm3, %v1045_v10, %v143_v24 }
  0x8a   :  { %718 = vmatmul.mubr.f32.vlgmr.msra.gmra.mxu0 %v155_v25  ;;  %723 = vmatmul.mubr.f32.vlgmr.msra.gmra.mxu1 %v155_v25 }
  0x8b   :  { %727 = vmatprep.mubr.msk.f32.mxu0 %vm947_vm0, %v946_v0  ;;  %732 = vmatprep.mubr.msk.f32.mxu1 %vm947_vm0, %v946_v0 }
  0x8c   :  { %726 = vmatpush3.msk.msra.mxu0 %vm314_vm4, %v148_v26  ;;  %731 = vmatpush3.msk.msra.mxu1 %vm314_vm4, %v149_v27 }
  0x8d   :  { %735 = vmatprep.subr.mxu0 %v946_v0  ;;  %740 = vmatprep.subr.mxu1 %v946_v0 }
  0x95   :  { %v760_v59 = vpop.eup %759 }
  0x96   :  { %v645_v63 = vsub.f32 1.0, %v760_v59 }
  0x98   :  { %v646_v16 = vmul.f32 %v645_v63, %v1045_v10 }
 0x14a   :  { %v228_v30 = vpop.f32.mrf.mxu0  ;;  %v305_v31 = vpop.f32.mrf.mxu1 }
 0x14b   :  { %v229_v32 = vadd.f32 %v691_v28, %v228_v30  ;;  %v306_v33 = vadd.f32 %v692_v29, %v305_v31 }
 0x14c   :  { %v719_v34 = vpop.f32.mrf.mxu0  ;;  %v724_v35 = vpop.f32.mrf.mxu1 }
 0x14d   :  { %v232_v36 = vmax.f32 %v229_v32, 0.0  ;;  %v309_v37 = vmax.f32 %v306_v33, 0.0 }
 0x14f   :  { %v388_v39 = vrot.slane %v232_v36, 1  ;;  %728 = vmatmul.mubr.msk.f32.vlgmr.msra.gmra.mxu0 %vm310_vm5, %v232_v36  ;;  %v551_v41 = vrot.slane %v309_v37, 1 }
 0x150   :  { %736 = vmatpush3.msk.msra.mxu0 %vm314_vm4, %v150_v38  ;;  %737 = vmatprep.mubr.msk.f32.mxu0 %vm947_vm0, %v946_v0 }
 0x151   :  { %733 = vmatmul.mubr.msk.f32.vlgmr.msra.gmra.mxu1 %vm310_vm5, %v388_v39 }
 0x152   :  { %741 = vmatpush3.msk.msra.mxu1 %vm314_vm4, %v151_v40  ;;  %742 = vmatprep.mubr.msk.f32.mxu1 %vm947_vm0, %v946_v0  ;;  %v652_v0 = vmul.f32 %v645_v63, %v143_v24 }
 0x153   :  { %738 = vmatmul.mubr.msk.f32.vlgmr.msra.gmra.mxu0 %vm310_vm5, %v309_v37 }
 0x155   :  { %743 = vmatmul.mubr.msk.f32.vlgmr.msra.gmra.mxu1 %vm310_vm5, %v551_v41 }
 0x20f   :  { %v384_v48 = vpop.f32.mrf.mxu0 }
 0x210   :  { %v385_v12 = vadd.f32 %v384_v48, %v152_v46 }
 0x211   :  { %v729_v49 = vpop.f32.mrf.mxu0  ;;  %v463_v50 = vpop.f32.mrf.mxu1 }
 0x212   :  { %v464_v51 = vadd.f32 %v463_v50, %v390_v47  ;;  %v644_v15 = vmul.f32 %v760_v59, %v385_v12 }
 0x213   :  { %v734_v53 = vpop.f32.mrf.mxu1  ;;  %v542_v54 = vpop.f32.mrf.mxu0 }
 0x214   :  { %v467_v55 = vmax.f32 %v464_v51, 0.0  ;;  %v543_v7 = vadd.f32 %v542_v54, %v468_v4  ;;  %v647_v23 = vadd.f32 %v646_v16, %v644_v15 }
 0x215   :  { %v739_v56 = vpop.f32.mrf.mxu0  ;;  %v625_v57 = vpop.f32.mrf.mxu1 }
 0x216   :  { %v626_v58 = vadd.f32 %v625_v57, %v552_v52  ;;  %v649_v61 = vrot.slane %v467_v55, 7 }
 0x217   :  { %v744_v60 = vpop.f32.mrf.mxu1 }
 0x218   :  { %v701_v62 = vmul.f32 -1.442695, %v626_v58  ;;  %v651_v1 = vmul.f32 %v760_v59, %v649_v61 }
 0x21a   :  { %761 = vpow2.f32 %v701_v62  ;;  %v653_v2 = vadd.f32 %v652_v0, %v651_v1 }
 0x21c   :  { %v654_v5 = vadd.f32 1e-06, %v653_v2 }
 0x21e   :  { %v656_v8 = vrot.slane %v654_v5, 1 }
 0x227   :  { %v762_v6 = vpop.eup %761 }
 0x228   :  { %v632_v9 = vadd.f32 1.0, %v762_v6 }
 0x22a   :  { %763 = vrcp.f32 %v632_v9 }
 0x22b   :  { %765 = vtanh.f32 %v543_v7 }
 0x22c   :  { %767 = vrcp.f32 %v656_v8 }
 0x237   :  { %v764_v17 = vpop.eup %763 }
 0x238   :  { %v766_v18 = vpop.eup %765  ;;  %v637_v20 = vadd.f32 %v764_v17, %v635_v13 }
 0x239   :  { %v768_v22 = vpop.eup %767  ;;  %v550_v25 = vadd.f32 %v766_v18, %v548_v19 }
 0x23a   :  { %v659_v24 = vmul.f32 %v768_v22, %v637_v20 }
 0x23c   :  { %v660_v26 = vmul.f32 %v659_v24, %v647_v23  ;;  %v665_v27 = vrot.slane %v659_v24, %v664_v21 }
 0x23e   :  { %v661_v28 = vsub.f32 %v550_v25, %v660_v26  ;;  %v666_v29 = vmul.f32 %v665_v27, %v1039_v3 }
 0x240   :  { %v670_v30 = vrot.slane %v661_v28, %v664_v21 }
 0x242   :  { %v671_v31 = vadd.f32 %v670_v30, %v666_v29 }
 0x244   :  { %672 = vst [vmem:[#allocation14] sm:$0xff] %v671_v31 }
 0x245   :  { %920 = shalt.err (!%p917_p11)
}
 0x246   :  { %682 = dma.vmem_to_hbm [thread:$0]  %s680_s1, 128, %s1089_s11, [#allocation4]  }
 0x247   :  { %937 = dma.done.wait [#allocation4], 128  }
 0x248   :  { %938 = vsyncadd [#allocation4], 4294967168 }
 0x249   :  { %686 = vsyncpa [#allocation3], 1 }
 0x24a   :  { %687 = vsyncpa [#allocation6], 1 }
 0x24b   :  { %688 = vsyncpa [#allocation9], 1 }
 0x24c   :  { %689 = vsyncpa [#allocation12], 1 }
 0x24d   :  { %690 = vsyncpa [#allocation4], 1 }

</bundles_post_ra>
